<compile_context>
chip_gen: v7x
topology: tpu7x:2x2x1
jax: 0.10.0
libtpu: 0.0.40
codegen_flags: <defaults>
</compile_context>

<pallas_src>
import math

import jax
import jax.numpy as jnp
from jax.experimental import pallas as pl
from jax.experimental.pallas import tpu as pltpu

# ---- problem sizes (small, consistent with an SBI-style estimator) ----------
B = 8          # batch of simulations
D_THETA = 3    # simulator parameter dimension
D_X = 16       # observation dimension
HIDDEN = 32    # estimator hidden width
LMBDA = 100.0  # balancing regularization strength

_LOG_2PI = math.log(2.0 * math.pi)

# Packed parameter slab layout (all sections 8-sublane aligned), shape (56, 32):
#   rows 0:3   -> w1t rows (theta -> hidden), used as VPU broadcast MACs
#   row  3     -> b1
#   row  4     -> b2
#   row  5     -> w3^T  (hidden -> 1 head), used via lane reduce
#   row  6     -> b3 broadcast across the row
#   row  7     -> zero padding
#   rows 8:24  -> w1x  (D_X, HIDDEN)
#   rows 24:56 -> w2   (HIDDEN, HIDDEN)
_SMALL_ROWS = 8
_W1X_START = _SMALL_ROWS
_W2_START = _W1X_START + D_X
_TOTAL_ROWS = _W2_START + HIDDEN


def _pack_params(params):
    w1t, w1x, b1, w2, b2, w3, b3 = params
    small = jnp.concatenate(
        [
            w1t,                                          # (3, H)
            b1,                                           # (1, H)
            b2,                                           # (1, H)
            w3.T,                                         # (1, H)
            jnp.broadcast_to(b3, (1, HIDDEN)),            # (1, H)
            jnp.zeros((_SMALL_ROWS - 7, HIDDEN), jnp.float32),
        ],
        axis=0,
    )                                                     # (8, H)
    return jnp.concatenate([small, w1x, w2], axis=0)      # (56, H)


def _bnpe_loss_kernel(t2_ref, x_ref, p_ref, out_ref):
    # t2 = [theta; roll(theta, 1, axis=0)] stacked along the batch: (2B, D_theta)
    t2 = t2_ref[...]
    x = x_ref[...]

    # static views into the packed parameter slab (zero-cost Ref views)
    w1t_r0 = p_ref[0:1, :]
    w1t_r1 = p_ref[1:2, :]
    w1t_r2 = p_ref[2:3, :]
    b1 = p_ref[3:4, :]
    b2 = p_ref[4:5, :]
    w3_row = p_ref[5:6, :]
    b3 = p_ref[6:7, 0:1]                                   # (1, 1)
    w1x = p_ref[_W1X_START:_W2_START, :]                   # (D_X, H)
    w2 = p_ref[_W2_START:_TOTAL_ROWS, :]                   # (H, H)

    # x only needs one projection; replicate along the batch for the stacked
    # theta / theta_prime pass.  (B, D_X) @ (D_X, H) stays on the MXU.
    x_proj = jnp.dot(x, w1x, preferred_element_type=jnp.float32)   # (B, H)
    x_proj2 = jnp.concatenate([x_proj, x_proj], axis=0)            # (2B, H)

    # theta projection: K=3 matmul replaced by 3 VPU broadcast multiply-adds.
    t_proj = (t2[:, 0:1] * w1t_r0
              + t2[:, 1:2] * w1t_r1
              + t2[:, 2:3] * w1t_r2)                               # (2B, H)

    h = jnp.tanh(t_proj + x_proj2 + b1)                            # (2B, H)
    h = jnp.tanh(jnp.dot(h, w2, preferred_element_type=jnp.float32) + b2)

    # output head (N=1 matmul) as elementwise mul + lane reduce.
    logit = jnp.sum(h * w3_row, axis=-1, keepdims=True) + b3       # (2B, 1)

    log_p = logit[0:B, :]
    log_p_prime = logit[B:2 * B, :]

    # standard diagonal-Normal prior log-prob for the stacked batch.
    lp2 = (-0.5 * jnp.sum(t2 * t2, axis=-1, keepdims=True)
           - 0.5 * D_THETA * _LOG_2PI)                             # (2B, 1)
    lp_t = lp2[0:B, :]
    lp_tp = lp2[B:2 * B, :]

    def sigmoid(z):
        # exactly 1/(1+exp(-z)); keeps the work on the EUP (tanh) slot.
        return 0.5 * (jnp.tanh(0.5 * z) + 1.0)

    l0 = -jnp.mean(log_p)
    d = sigmoid(log_p - lp_t) + sigmoid(log_p_prime - lp_tp) - 1.0
    lb = jnp.mean(d) ** 2

    out_ref[0, 0] = l0 + LMBDA * lb


@jax.jit
def bnpe_loss(theta, x, packed_params):
    """theta: (B, D_theta) f32, x: (B, D_x) f32 -> scalar f32 loss."""
    # glue: roll + stack of an (8, 3) tensor on the XLA side (negligible);
    # keeps the kernel at 3 input DMAs and a single stacked estimator pass.
    theta2 = jnp.concatenate([theta, jnp.roll(theta, 1, axis=0)], axis=0)
    out = pl.pallas_call(
        _bnpe_loss_kernel,
        out_shape=jax.ShapeDtypeStruct((1, 1), jnp.float32),
        in_specs=[pl.BlockSpec(memory_space=pltpu.MemorySpace.VMEM)] * 3,
        out_specs=pl.BlockSpec(memory_space=pltpu.MemorySpace.SMEM),
    )(theta2, x, packed_params)
    return out[0, 0]


def _reference_loss(theta, x, params):
    """Pure-JAX reference mirroring the PyTorch forward."""
    w1t, w1x, b1, w2, b2, w3, b3 = params
    theta_prime = jnp.roll(theta, 1, axis=0)

    def estimator(t):
        h = jnp.tanh(t @ w1t + x @ w1x + b1)
        h = jnp.tanh(h @ w2 + b2)
        return h @ w3 + b3  # (B, 1)

    def prior_log_prob(t):
        return -0.5 * jnp.sum(t * t, axis=-1, keepdims=True) - 0.5 * D_THETA * _LOG_2PI

    log_p = estimator(theta)
    log_p_prime = estimator(theta_prime)
    l0 = -jnp.mean(log_p)
    d = (jax.nn.sigmoid(log_p - prior_log_prob(theta))
         + jax.nn.sigmoid(log_p_prime - prior_log_prob(theta_prime)) - 1.0)
    lb = jnp.mean(d) ** 2
    return l0 + LMBDA * lb


def _init_params(key):
    ks = jax.random.split(key, 7)
    d_in = D_THETA + D_X
    scale1 = 1.0 / math.sqrt(d_in)
    scale2 = 1.0 / math.sqrt(HIDDEN)
    w1t = jax.random.normal(ks[0], (D_THETA, HIDDEN), jnp.float32) * scale1
    w1x = jax.random.normal(ks[1], (D_X, HIDDEN), jnp.float32) * scale1
    b1 = jax.random.normal(ks[2], (1, HIDDEN), jnp.float32) * 0.01
    w2 = jax.random.normal(ks[3], (HIDDEN, HIDDEN), jnp.float32) * scale2
    b2 = jax.random.normal(ks[4], (1, HIDDEN), jnp.float32) * 0.01
    w3 = jax.random.normal(ks[5], (HIDDEN, 1), jnp.float32) * scale2
    b3 = jax.random.normal(ks[6], (1, 1), jnp.float32) * 0.01
    return (w1t, w1x, b1, w2, b2, w3, b3)


if __name__ == "__main__":
    key = jax.random.PRNGKey(0)
    k_theta, k_x, k_p = jax.random.split(key, 3)

    theta = jax.random.normal(k_theta, (B, D_THETA), jnp.float32)
    x = jax.random.normal(k_x, (B, D_X), jnp.float32)
    params = _init_params(k_p)
    packed = _pack_params(params)

    loss = jax.block_until_ready(bnpe_loss(theta, x, packed))
    ref = jax.block_until_ready(_reference_loss(theta, x, params))
    assert jnp.allclose(loss, ref, atol=1e-4, rtol=1e-4), (loss, ref)

    print("KERNEL_OK")
</pallas_src>

<mosaic_0001>
module attributes {stable_mosaic.version = 11 : i64} {
  func.func @_bnpe_loss_kernel(%arg0: memref<16x3xf32, #tpu.memory_space<vmem>>, %arg1: memref<8x16xf32, #tpu.memory_space<vmem>>, %arg2: memref<56x32xf32, #tpu.memory_space<vmem>>, %arg3: memref<1x1xf32, #tpu.memory_space<smem>>) attributes {dimension_semantics = [], scalar_prefetch = 0 : i64, scratch_operands = 0 : i64, tpu.core_type = #tpu.core_type<tc>} {
    %c0 = arith.constant 0 : index
    %c0_0 = arith.constant 0 : index
    %0 = vector.load %arg0[%c0, %c0_0] : memref<16x3xf32, #tpu.memory_space<vmem>>, vector<16x3xf32>
    %c0_1 = arith.constant 0 : index
    %c0_2 = arith.constant 0 : index
    %1 = vector.load %arg1[%c0_1, %c0_2] : memref<8x16xf32, #tpu.memory_space<vmem>>, vector<8x16xf32>
    %c0_3 = arith.constant 0 : index
    %c0_4 = arith.constant 0 : index
    %2 = vector.load %arg2[%c0_3, %c0_4] : memref<56x32xf32, #tpu.memory_space<vmem>>, vector<1x32xf32>
    %c1 = arith.constant 1 : index
    %c0_5 = arith.constant 0 : index
    %3 = vector.load %arg2[%c1, %c0_5] : memref<56x32xf32, #tpu.memory_space<vmem>>, vector<1x32xf32>
    %c2 = arith.constant 2 : index
    %c0_6 = arith.constant 0 : index
    %4 = vector.load %arg2[%c2, %c0_6] : memref<56x32xf32, #tpu.memory_space<vmem>>, vector<1x32xf32>
    %c3 = arith.constant 3 : index
    %c0_7 = arith.constant 0 : index
    %5 = vector.load %arg2[%c3, %c0_7] : memref<56x32xf32, #tpu.memory_space<vmem>>, vector<1x32xf32>
    %c4 = arith.constant 4 : index
    %c0_8 = arith.constant 0 : index
    %6 = vector.load %arg2[%c4, %c0_8] : memref<56x32xf32, #tpu.memory_space<vmem>>, vector<1x32xf32>
    %c5 = arith.constant 5 : index
    %c0_9 = arith.constant 0 : index
    %7 = vector.load %arg2[%c5, %c0_9] : memref<56x32xf32, #tpu.memory_space<vmem>>, vector<1x32xf32>
    %c6 = arith.constant 6 : index
    %c0_10 = arith.constant 0 : index
    %8 = vector.load %arg2[%c6, %c0_10] : memref<56x32xf32, #tpu.memory_space<vmem>>, vector<1x1xf32>
    %c8 = arith.constant 8 : index
    %c0_11 = arith.constant 0 : index
    %9 = vector.load %arg2[%c8, %c0_11] : memref<56x32xf32, #tpu.memory_space<vmem>>, vector<16x32xf32>
    %c24 = arith.constant 24 : index
    %c0_12 = arith.constant 0 : index
    %10 = vector.load %arg2[%c24, %c0_12] : memref<56x32xf32, #tpu.memory_space<vmem>>, vector<32x32xf32>
    %cst = arith.constant dense<0.000000e+00> : vector<8x32xf32>
    %11 = tpu.matmul %1, %9, %cst {dimension_numbers = #tpu.dot_dimension_numbers<[1], [0], [0], [1], [0, 0, 1, 1], [], []>} : vector<8x16xf32>, vector<16x32xf32>, vector<8x32xf32> -> vector<8x32xf32>
    %12 = tpu.concatenate %11, %11 in 0 : vector<8x32xf32>, vector<8x32xf32> -> vector<16x32xf32>
    %13 = vector.extract_strided_slice %0 {offsets = [0, 0], sizes = [16, 1], strides = [1, 1]} : vector<16x3xf32> to vector<16x1xf32>
    %14 = vector.broadcast %13 : vector<16x1xf32> to vector<16x32xf32>
    %15 = vector.broadcast %2 : vector<1x32xf32> to vector<16x32xf32>
    %16 = arith.mulf %14, %15 : vector<16x32xf32>
    %17 = vector.extract_strided_slice %0 {offsets = [0, 1], sizes = [16, 1], strides = [1, 1]} : vector<16x3xf32> to vector<16x1xf32>
    %18 = vector.broadcast %17 : vector<16x1xf32> to vector<16x32xf32>
    %19 = vector.broadcast %3 : vector<1x32xf32> to vector<16x32xf32>
    %20 = arith.mulf %18, %19 : vector<16x32xf32>
    %21 = arith.addf %16, %20 : vector<16x32xf32>
    %22 = vector.extract_strided_slice %0 {offsets = [0, 2], sizes = [16, 1], strides = [1, 1]} : vector<16x3xf32> to vector<16x1xf32>
    %23 = vector.broadcast %22 : vector<16x1xf32> to vector<16x32xf32>
    %24 = vector.broadcast %4 : vector<1x32xf32> to vector<16x32xf32>
    %25 = arith.mulf %23, %24 : vector<16x32xf32>
    %26 = arith.addf %21, %25 : vector<16x32xf32>
    %27 = arith.addf %26, %12 : vector<16x32xf32>
    %28 = vector.broadcast %5 : vector<1x32xf32> to vector<16x32xf32>
    %29 = arith.addf %27, %28 : vector<16x32xf32>
    %30 = math.tanh %29 : vector<16x32xf32>
    %cst_13 = arith.constant dense<0.000000e+00> : vector<16x32xf32>
    %31 = tpu.matmul %30, %10, %cst_13 {dimension_numbers = #tpu.dot_dimension_numbers<[1], [0], [0], [1], [0, 0, 1, 1], [], []>} : vector<16x32xf32>, vector<32x32xf32>, vector<16x32xf32> -> vector<16x32xf32>
    %32 = vector.broadcast %6 : vector<1x32xf32> to vector<16x32xf32>
    %33 = arith.addf %31, %32 : vector<16x32xf32>
    %34 = math.tanh %33 : vector<16x32xf32>
    %35 = vector.broadcast %7 : vector<1x32xf32> to vector<16x32xf32>
    %36 = arith.mulf %34, %35 : vector<16x32xf32>
    %cst_14 = arith.constant dense<0.000000e+00> : vector<16xf32>
    %37 = vector.multi_reduction <add>, %36, %cst_14 [1] : vector<16x32xf32> to vector<16xf32>
    %38 = vector.shape_cast %37 : vector<16xf32> to vector<16x1xf32>
    %39 = vector.broadcast %8 : vector<1x1xf32> to vector<16x1xf32>
    %40 = arith.addf %38, %39 : vector<16x1xf32>
    %41 = vector.extract_strided_slice %40 {offsets = [0, 0], sizes = [8, 1], strides = [1, 1]} : vector<16x1xf32> to vector<8x1xf32>
    %42 = vector.extract_strided_slice %40 {offsets = [8, 0], sizes = [8, 1], strides = [1, 1]} : vector<16x1xf32> to vector<8x1xf32>
    %43 = arith.mulf %0, %0 : vector<16x3xf32>
    %cst_15 = arith.constant dense<0.000000e+00> : vector<16xf32>
    %44 = vector.multi_reduction <add>, %43, %cst_15 [1] : vector<16x3xf32> to vector<16xf32>
    %45 = vector.shape_cast %44 : vector<16xf32> to vector<16x1xf32>
    %cst_16 = arith.constant -5.000000e-01 : f32
    %46 = vector.broadcast %cst_16 : f32 to vector<16x1xf32>
    %47 = arith.mulf %46, %45 : vector<16x1xf32>
    %cst_17 = arith.constant 2.75681567 : f32
    %48 = vector.broadcast %cst_17 : f32 to vector<16x1xf32>
    %49 = arith.subf %47, %48 : vector<16x1xf32>
    %50 = vector.extract_strided_slice %49 {offsets = [0, 0], sizes = [8, 1], strides = [1, 1]} : vector<16x1xf32> to vector<8x1xf32>
    %51 = vector.extract_strided_slice %49 {offsets = [8, 0], sizes = [8, 1], strides = [1, 1]} : vector<16x1xf32> to vector<8x1xf32>
    %52 = vector.shape_cast %41 : vector<8x1xf32> to vector<1x8x1xf32>
    %cst_18 = arith.constant dense<0.000000e+00> : vector<1xf32>
    %53 = vector.multi_reduction <add>, %52, %cst_18 [1, 2] : vector<1x8x1xf32> to vector<1xf32>
    %54 = vector.shape_cast %53 : vector<1xf32> to vector<1x1x1xf32>
    %55 = vector.extract %54[0, 0, 0] : f32 from vector<1x1x1xf32>
    %cst_19 = arith.constant 8.000000e+00 : f32
    %56 = arith.divf %55, %cst_19 : f32
    %cst_20 = arith.constant 0.000000e+00 : f32
    %57 = arith.subf %cst_20, %56 : f32
    %58 = arith.subf %41, %50 : vector<8x1xf32>
    %cst_21 = arith.constant 5.000000e-01 : f32
    %59 = vector.broadcast %cst_21 : f32 to vector<8x1xf32>
    %60 = arith.mulf %59, %58 : vector<8x1xf32>
    %61 = math.tanh %60 : vector<8x1xf32>
    %cst_22 = arith.constant 1.000000e+00 : f32
    %62 = vector.broadcast %cst_22 : f32 to vector<8x1xf32>
    %63 = arith.addf %61, %62 : vector<8x1xf32>
    %cst_23 = arith.constant 5.000000e-01 : f32
    %64 = vector.broadcast %cst_23 : f32 to vector<8x1xf32>
    %65 = arith.mulf %64, %63 : vector<8x1xf32>
    %66 = arith.subf %42, %51 : vector<8x1xf32>
    %cst_24 = arith.constant 5.000000e-01 : f32
    %67 = vector.broadcast %cst_24 : f32 to vector<8x1xf32>
    %68 = arith.mulf %67, %66 : vector<8x1xf32>
    %69 = math.tanh %68 : vector<8x1xf32>
    %cst_25 = arith.constant 1.000000e+00 : f32
    %70 = vector.broadcast %cst_25 : f32 to vector<8x1xf32>
    %71 = arith.addf %69, %70 : vector<8x1xf32>
    %cst_26 = arith.constant 5.000000e-01 : f32
    %72 = vector.broadcast %cst_26 : f32 to vector<8x1xf32>
    %73 = arith.mulf %72, %71 : vector<8x1xf32>
    %74 = arith.addf %65, %73 : vector<8x1xf32>
    %cst_27 = arith.constant 1.000000e+00 : f32
    %75 = vector.broadcast %cst_27 : f32 to vector<8x1xf32>
    %76 = arith.subf %74, %75 : vector<8x1xf32>
    %77 = vector.shape_cast %76 : vector<8x1xf32> to vector<1x8x1xf32>
    %cst_28 = arith.constant dense<0.000000e+00> : vector<1xf32>
    %78 = vector.multi_reduction <add>, %77, %cst_28 [1, 2] : vector<1x8x1xf32> to vector<1xf32>
    %79 = vector.shape_cast %78 : vector<1xf32> to vector<1x1x1xf32>
    %80 = vector.extract %79[0, 0, 0] : f32 from vector<1x1x1xf32>
    %cst_29 = arith.constant 8.000000e+00 : f32
    %81 = arith.divf %80, %cst_29 : f32
    %82 = arith.mulf %81, %81 : f32
    %cst_30 = arith.constant 1.000000e+02 : f32
    %83 = arith.mulf %cst_30, %82 : f32
    %84 = arith.addf %57, %83 : f32
    %c0_31 = arith.constant 0 : index
    %c0_32 = arith.constant 0 : index
    %85 = memref.load %arg3[%c0_31, %c0_32] : memref<1x1xf32, #tpu.memory_space<smem>>
    memref.store %84, %arg3[%c0_31, %c0_32] : memref<1x1xf32, #tpu.memory_space<smem>>
    return
  }
}

</mosaic_0001>

<bundles_post_ra>
// kernel: bnpe_loss.1
= control target key start
LH: loop header
LB: loop body
LE: loop exit
PB: predicated region body
PF: predicated region fallthrough
CT: control target
= control target key end

     0   :  { %v432_v2 = vmov 0.0|0.0   ;;  %vm433_vm0 = vmmov 0   ;;  %v434_v4 = vmov 0.0   ;;  %v435_v7 = vmov 0   ;;  %s539_s0 = inlined_call_operand.vmem [shape: f32[16,3], index: 0, kind: input, shape index: {}]   ;;  %s540_s1 = inlined_call_operand.vmem [shape: f32[8,16], index: 1, kind: input, shape index: {}]   ;;  %s541_s2 = inlined_call_operand.vmem [shape: f32[56,32], index: 2, kind: input, shape index: {}]   ;;  %s542_s3 = inlined_call_operand.hbm [shape: f32[1,1], index: 3, kind: output, shape index: {}]  }
   0x1   :  { %v25_v0 = vld [vmem:[%s541_s2 + $0x8] sm:$0xff]  ;;  %v26_v1 = vld [vmem:[%s541_s2 + $0x10] sm:$0xff]  ;;  %380 = vmatprep.subr.bf16.mxu0 %v432_v2  ;;  %366 = vmatprep.mubr.msk.f32.mxu0 %vm433_vm0, %v434_v4  ;;  %v468_v5 = vld [vmem:[%s539_s0] sm:$0xff] }
   0x2   :  { %v381_v3 = vpack.c.bf16 %v26_v1, %v25_v0  ;;  %v473_v6 = vld [vmem:[%s539_s0 + $0x8] sm:$0xff]  ;;  %402 = vset.pattern.permute.xlu0 %v435_v7  ;;  %404 = vset.pattern.permute.xlu1 %v435_v7 }
   0x3   :  { %8 = vsyncpa [#allocation3], 0  ;;  %v17_v8 = vld [vmem:[%s540_s1] sm:$0xff]  ;;  %vm31_vm1 = vcmask 130048   ;;  %107 = vperm.xlu0 %402, %v468_v5   ;;  %112 = vperm.xlu1 %404, %v473_v6   ;;  %v436_v9 = vmov 1   ;;  %v437_v10 = vmov 2   ;;  %v270_v45 = vmul.f32 %v473_v6, %v473_v6 }
   0x4   :  { %382 = vmatpush3.bf16.msra.mxu0 %v381_v3  ;;  %v27_v11 = vld [vmem:[%s541_s2 + $0x18] sm:$0xff]  ;;  %v28_v12 = vld [vmem:[%s541_s2 + $0x20] sm:$0xff]  ;;  %v29_v13 = vld [vmem:[%s541_s2 + $0x28] sm:$0xff]  ;;  %vm167_vm2 = vcmask 261120   ;;  %vm271_vm3 = vcmask 23552   ;;  %v269_v46 = vmul.f32 %v468_v5, %v468_v5  ;;  %vm282_vm4 = vcmask 7168  }
   0x5   :  { %v383_v14 = vpack.c.bf16 %v28_v12, %v27_v11  ;;  %v30_v15 = vld [vmem:[%s541_s2 + $0x30] sm:$0xff]  ;;  %v341_v21 = vld [vmem:[%s541_s2] ss:$0 sm:$0xff]  ;;  %v342_v22 = vld [vmem:[%s541_s2 + $0x1] ss:$0 sm:$0xff]  ;;  %v275_v47 = vsel %vm271_vm3, %v270_v45, 0.0 }
   0x6   :  { %v387_v16 = vpack.c.bf16 %v30_v15, %v29_v13  ;;  %v343_v27 = vld [vmem:[%s541_s2 + $0x2] ss:$0 sm:$0xff]  ;;  %v344_v36 = vld [vmem:[%s541_s2 + $0x3] ss:$0 sm:$0xff]  ;;  %v272_v48 = vsel %vm271_vm3, %v269_v46, 0.0  ;;  %s420_s22 = scalar_lea.hbm %s542_s3, 16 }
   0x7   :  { %367 = vmatmul.mubr.msk.f32.vlgmr.msra.gmra.mrb[0].mxu0 %vm31_vm1, %v17_v8  ;;  %403 = vset.pattern.permute.xlu0 %v436_v9  ;;  %v345_v49 = vld [vmem:[%s541_s2 + $0x4] ss:$0 sm:$0xff]  ;;  %v348_v54 = vld [vmem:[%s541_s2 + $0x5] ss:$0 sm:$0xff]  ;;  %v349_v1 = vld [vmem:[%s541_s2 + $0x6] ss:$0 sm:$0xff]  ;;  %p421_p0 = scmp.ne.s32.totalorder %s542_s3, %s420_s22  ;;  %p424_p1 = scmp.lt.u32.totalorder %s420_s22, %s542_s3 }
   0x8   :  { %405 = vset.pattern.permute.xlu1 %v436_v9  ;;  %122 = vperm.xlu0 %403, %v468_v5  }
   0x9   :  { %126 = vperm.xlu1 %405, %v473_v6   ;;  %384 = vmatprep.subr.bf16.mxu1 %v383_v14  ;;  %p426_p2 = pnand %p424_p1, %p421_p0 }
   0xa   :  { %386 = vmatpush3.bf16.msra.mxu1 %v383_v14 }
   0xb   :  { %388 = vmatprep.subr.bf16.mxu1 %v387_v16 }
   0xc   :  { %407 = vset.pattern.permute.xlu0 %v437_v10 }
   0xd   :  { %406 = vset.pattern.permute.xlu1 %v437_v10  ;;  %142 = vperm.xlu0 %407, %v473_v6  }
   0xe   :  { %138 = vperm.xlu1 %406, %v468_v5   ;;  %390 = vmatpush3.bf16.msra.mxu1 %v387_v16 }
  0x2c   :  { %276 = vadd.xlane.f32.xlu0 %v275_v47 }
  0x32   :  { %273 = vadd.xlane.f32.xlu1 %v272_v48 }
  0x82   :  { %v108_v17 = vpop.permute.xlu0 %107  ;;  %v113_v18 = vpop.permute.xlu1 %112 }
  0x83   :  { %v119_v23 = vmul.f32 %v341_v21, %v108_v17  ;;  %v120_v24 = vmul.f32 %v341_v21, %v113_v18 }
  0x87   :  { %v123_v19 = vpop.permute.xlu0 %122 }
  0x88   :  { %v127_v20 = vpop.permute.xlu1 %126  ;;  %v133_v25 = vmul.f32 %v342_v22, %v123_v19 }
  0x89   :  { %v134_v26 = vmul.f32 %v342_v22, %v127_v20 }
  0x8a   :  { %v135_v30 = vadd.f32 %v133_v25, %v119_v23 }
  0x8b   :  { %v136_v31 = vadd.f32 %v134_v26, %v120_v24 }
  0x8c   :  { %v143_v28 = vpop.permute.xlu0 %142 }
  0x8d   :  { %v139_v29 = vpop.permute.xlu1 %138  ;;  %v150_v32 = vmul.f32 %v343_v27, %v143_v28 }
  0x8e   :  { %v149_v33 = vmul.f32 %v343_v27, %v139_v29 }
  0x8f   :  { %v152_v34 = vadd.f32 %v150_v32, %v136_v31 }
  0x90   :  { %v151_v35 = vadd.f32 %v149_v33, %v135_v30 }
  0xb9   :  { %v277_v61 = vpop.xlane.xlu0 %276 }
  0xba   :  { %v279_v62 = vmul.f32 -0.5, %v277_v61 }
  0xbc   :  { %v351_v2 = vadd.f32 -2.7568157, %v279_v62 }
  0xbf   :  { %v274_v63 = vpop.xlane.xlu1 %273 }
  0xc0   :  { %v278_v0 = vmul.f32 -0.5, %v274_v63 }
  0xc2   :  { %v350_v6 = vadd.f32 -2.7568157, %v278_v0 }
  0xda   :  { %v101_v37 = vpop.f32.mrb[0].mxu0 }
  0xdb   :  { %v153_v38 = vadd.f32 %v151_v35, %v101_v37  ;;  %v154_v39 = vadd.f32 %v152_v34, %v101_v37  ;;  %v368_v40 = vpop.f32.mrb[1].mxu0 }
  0xdd   :  { %v159_v41 = vadd.f32 %v344_v36, %v153_v38  ;;  %v160_v42 = vadd.f32 %v344_v36, %v154_v39 }
  0xdf   :  { %408 = vtanh.f32 %v159_v41 }
  0xe0   :  { %410 = vtanh.f32 %v160_v42 }
  0xe9   :  { %v409_v43 = vpop.eup %408 }
  0xea   :  { %v411_v44 = vpop.eup %410  ;;  %377 = vmatprep.mubr.msk.f32.mxu1 %vm167_vm2, %v409_v43 }
  0xeb   :  { %378 = vmatmul.mubr.msk.f32.vlgmr.msra.gmra.mrb[0].mxu1 %vm167_vm2, %v411_v44 }
 0x1be   :  { %v379_v50 = vpop.f32.mrb[0].mxu1 }
 0x1bf   :  { %v246_v51 = vadd.f32 %v379_v50, %v345_v49  ;;  %v240_v52 = vpop.f32.mrb[1].mxu1 }
 0x1c0   :  { %v241_v53 = vadd.f32 %v345_v49, %v240_v52 }
 0x1c1   :  { %412 = vtanh.f32 %v246_v51 }
 0x1c2   :  { %414 = vtanh.f32 %v241_v53 }
 0x1cb   :  { %v413_v55 = vpop.eup %412 }
 0x1cc   :  { %v415_v56 = vpop.eup %414  ;;  %v256_v57 = vmul.f32 %v413_v55, %v348_v54 }
 0x1cd   :  { %v255_v58 = vmul.f32 %v415_v56, %v348_v54 }
 0x1ce   :  { %v260_v59 = vsel %vm167_vm2, %v256_v57, 0.0 }
 0x1cf   :  { %261 = vadd.xlane.f32.xlu0 %v260_v59  ;;  %v257_v60 = vsel %vm167_vm2, %v255_v58, 0.0 }
 0x1d0   :  { %258 = vadd.xlane.f32.xlu1 %v257_v60 }
 0x25c   :  { %v262_v3 = vpop.xlane.xlu0 %261 }
 0x25d   :  { %v268_v4 = vadd.f32 %v349_v1, %v262_v3  ;;  %v259_v5 = vpop.xlane.xlu1 %258 }
 0x25e   :  { %v267_v7 = vadd.f32 %v349_v1, %v259_v5 }
 0x25f   :  { %v302_v8 = vsub.f32 %v268_v4, %v351_v2 }
 0x260   :  { %v297_v9 = vsub.f32 %v267_v7, %v350_v6  ;;  %v283_v10 = vsel %vm282_vm4, %v267_v7, 0.0 }
 0x261   :  { %v303_v11 = vmul.f32 0.5, %v302_v8  ;;  %284 = vadd.xlane.f32.xlu1 %v283_v10 }
 0x262   :  { %v298_v12 = vmul.f32 0.5, %v297_v9 }
 0x263   :  { %416 = vtanh.f32 %v303_v11 }
 0x264   :  { %418 = vtanh.f32 %v298_v12 }
 0x26d   :  { %v417_v13 = vpop.eup %416 }
 0x26e   :  { %v419_v14 = vpop.eup %418  ;;  %v305_v15 = vadd.f32 1.0, %v417_v13 }
 0x26f   :  { %v300_v16 = vadd.f32 1.0, %v419_v14 }
 0x270   :  { %v306_v17 = vmul.f32 0.5, %v305_v15 }
 0x271   :  { %v301_v18 = vmul.f32 0.5, %v300_v16 }
 0x273   :  { %v307_v19 = vadd.f32 %v306_v17, %v301_v18 }
 0x275   :  { %v352_v20 = vadd.f32 -1.0, %v307_v19 }
 0x277   :  { %v309_v21 = vsel %vm282_vm4, %v352_v20, 0.0 }
 0x278   :  { %310 = vadd.xlane.f32.xlu0 %v309_v21 }
 0x2ee   :  { %v285_v22 = vpop.xlane.xlu1 %284 }
 0x2ef   :  { %v286_v23 = vrot.slane %v285_v22, 4 }
 0x2f1   :  { %v287_v24 = vadd.f32 %v286_v23, %v285_v22 }
 0x2f3   :  { %v288_v25 = vrot.slane %v287_v24, 2 }
 0x2f5   :  { %v289_v26 = vadd.f32 %v288_v25, %v287_v24 }
 0x2f7   :  { %v290_v27 = vrot.slane %v289_v26, 1 }
 0x2f9   :  { %v291_v28 = vadd.f32 %v290_v27, %v289_v26 }
 0x2fb   :  { %391 = vpush %v291_v28 }
 0x305   :  { %v311_v29 = vpop.xlane.xlu0 %310 }
 0x306   :  { %v312_v30 = vrot.slane %v311_v29, 4 }
 0x308   :  { %v313_v31 = vadd.f32 %v312_v30, %v311_v29 }
 0x30a   :  { %v314_v32 = vrot.slane %v313_v31, 2 }
 0x30c   :  { %v315_v33 = vadd.f32 %v314_v32, %v313_v31 }
 0x30e   :  { %v316_v34 = vrot.slane %v315_v33, 1 }
 0x310   :  { %v317_v35 = vadd.f32 %v316_v34, %v315_v33 }
 0x312   :  { %393 = vpush %v317_v35 }
 0x32c   :  { %s392_s2 = spop %391 }
 0x32d   :  { %s295_s15 = smul.f32 0.125, %s392_s2 }
 0x32f   :  { %s296_s19 = ssub.f32 0.0, %s295_s15 }
 0x343   :  { %s394_s16 = spop %393 }
 0x344   :  { %s321_s17 = smul.f32 0.125, %s394_s16 }
 0x346   :  { %s322_s18 = smul.f32 %s321_s17, %s321_s17 }
 0x348   :  { %s323_s20 = smul.f32 100.0, %s322_s18 }
 0x34a   :  { %s324_s21 = sadd.f32 %s323_s20, %s296_s19 }
 0x34c   :  { %326 = sst [smem:[#allocation2]] %s324_s21 }
 0x34d   :  { %429 = shalt.err (!%p426_p2)
}
 0x34e   :  { %s438_s27 = smov [#allocation2]  }
 0x34f   :  { %334 = dma.smem_to_hbm %s438_s27, 16, %s542_s3, [#allocation3]  }
 0x350   :  { %430 = dma.done.wait [#allocation3], 16  }
 0x351   :  { %431 = vsyncadd [#allocation3], 4294967280 }
 0x352   :  { %338 = sfence }
 0x353   :  { %339 = vsyncpa [#allocation3], 1 }

</bundles_post_ra>
